<compile_context>
chip_gen: v7x
topology: tpu7x:2x2x1
jax: 0.10.0
libtpu: 0.0.40
codegen_flags: <defaults>
</compile_context>

<pallas_src>
import functools

import jax
import jax.numpy as jnp
from jax import lax
from jax.experimental import pallas as pl
from jax.experimental.pallas import tpu as pltpu

EPS = 1e-6
LANES = 128
_FOLD_W_MAX = 64            # fold H onto lanes only for tiny W (avoids lane waste)
_FOLD_LANE_TARGET = 256     # aim for ~2 vregs of lanes after folding
_MAX_TC = 2048              # max lane-tile width (multiple of 128)
_OUT_BLOCK_BYTES = 1 << 20  # cap each output (accumulator) block at 1 MiB


def _round_up(x, m):
    return (x + m - 1) // m * m


def _cdiv(a, b):
    return -(-a // b)


def _target_block_bytes():
    """Per-input VMEM block budget, generation aware."""
    try:
        kind = jax.devices()[0].device_kind.lower()
    except Exception:
        kind = ""
    if "v7" in kind or "7x" in kind or "tpu7" in kind:
        # v7x: per-step overhead is worth ~1 MiB of transfer at 3.2 TB/s, so use
        # bigger blocks; 2 inputs x 2 buffers x 4 MiB = 16 MiB < 32 MiB scoped VMEM.
        return 4 * 1024 * 1024
    # v5e/v6e: 2 MiB/input is already past the DMA-efficiency knee and keeps the
    # double-buffered footprint well under v5e's 16 MiB scoped-VMEM default.
    return 2 * 1024 * 1024


def _wire_dtype(x):
    """Keep inputs narrow on the wire; the f32 upcast happens inside the kernel."""
    if jnp.issubdtype(x.dtype, jnp.floating):
        return x                            # f32 / bf16 / f16 stream as-is
    if x.dtype == jnp.bool_:
        return x.astype(jnp.int8)           # 1 byte/elem instead of 4 (f32)
    if x.dtype in (jnp.int8, jnp.uint8, jnp.int32):
        return x                            # native integer stream
    return x.astype(jnp.float32)


def _dice_sums_kernel(yp_ref, yt_ref, num_ref, sq_ref, *, h_total, t_h, mask_h):
    """grid = (g_tiles [parallel], c_tiles [parallel], h_tiles [arbitrary/reduction]).

    yp_ref / yt_ref : (t_g, t_h, t_c) input blocks (float or narrow int dtype).
    num_ref         : (t_g, 1, t_c) f32 output, accumulates sum_H(yt * yp).
    sq_ref          : (t_g, 1, t_c) f32 output, accumulates sum_H((yt + yp)^2).

    The output blocks themselves are the accumulators (same block index across the
    h axis). Ragged H tails are masked here; ragged G / C tails produce garbage in
    positions that Pallas clips at output writeback, so they never reach HBM.
    """
    h = pl.program_id(2)

    @pl.when(h == 0)
    def _init():
        num_ref[...] = jnp.zeros_like(num_ref)
        sq_ref[...] = jnp.zeros_like(sq_ref)

    yp = yp_ref[...].astype(jnp.float32)
    yt = yt_ref[...].astype(jnp.float32)

    if mask_h:
        rem = h_total - h * t_h                                  # valid rows this tile
        row = lax.broadcasted_iota(jnp.int32, yp.shape, 1)
        keep = row < rem
        yp = jnp.where(keep, yp, 0.0)
        yt = jnp.where(keep, yt, 0.0)

    s = yt + yp
    # den is reconstructed in the wrapper as S2 - 2*S1 (fewer per-element VALU ops).
    num_ref[...] += jnp.sum(yt * yp, axis=1, keepdims=True)      # (t_g, 1, t_c)
    sq_ref[...] += jnp.sum(s * s, axis=1, keepdims=True)         # (t_g, 1, t_c)


def _pick_c_tile(G, C):
    """Full-dim lane block unless splitting buys megacore parallelism / bounds width."""
    want_split = (G <= 2 and C >= 256) or (C > _MAX_TC)
    if not want_split:
        return C                                # full array dim: always a legal block
    n = max(2 if G <= 2 else 1, _cdiv(C, _MAX_TC))
    t_c = _round_up(_cdiv(C, n), LANES)
    return C if t_c >= C else t_c


def _pick_tiles(G, H, C, itemsizes, target_bytes):
    min_item = min(itemsizes)
    align = 32 if min_item == 1 else (16 if min_item == 2 else 8)   # sublane packing
    t_c = _pick_c_tile(G, C)
    row_bytes = t_c * max(itemsizes)
    rows_budget = max(align, target_bytes // row_bytes)
    if H <= rows_budget:
        t_h = H                                 # one H step: full-dim block, no mask
    else:
        n_h = _cdiv(H, rows_budget)
        t_h = _round_up(_cdiv(H, n_h), align)   # balanced tiles -> small masked tail
        if t_h >= H:
            t_h = H
    if t_h == H:
        out_cap = max(1, _OUT_BLOCK_BYTES // (t_c * 4))
        t_g = max(1, min(G, rows_budget // max(t_h, 1), out_cap))
    else:
        t_g = 1
    return t_g, t_h, t_c


def _dice_sums(yp3, yt3, target_bytes):
    """yp3/yt3: (G, H, C); reduction over H. Returns (num, sq), each (G, C) f32."""
    G, H, C = yp3.shape
    itemsizes = (yp3.dtype.itemsize, yt3.dtype.itemsize)
    t_g, t_h, t_c = _pick_tiles(G, H, C, itemsizes, target_bytes)
    grid = (_cdiv(G, t_g), _cdiv(C, t_c), _cdiv(H, t_h))

    kernel = functools.partial(
        _dice_sums_kernel, h_total=H, t_h=t_h, mask_h=(H % t_h != 0))
    out_sd = jax.ShapeDtypeStruct((G, 1, C), jnp.float32)

    num, sq = pl.pallas_call(
        kernel,
        out_shape=(out_sd, out_sd),
        grid_spec=pltpu.PrefetchScalarGridSpec(
            num_scalar_prefetch=0,
            grid=grid,
            in_specs=[
                pl.BlockSpec((t_g, t_h, t_c), lambda g, c, h: (g, h, c)),
                pl.BlockSpec((t_g, t_h, t_c), lambda g, c, h: (g, h, c)),
            ],
            out_specs=[
                pl.BlockSpec((t_g, 1, t_c), lambda g, c, h: (g, 0, c)),
                pl.BlockSpec((t_g, 1, t_c), lambda g, c, h: (g, 0, c)),
            ],
        ),
        compiler_params=pltpu.CompilerParams(
            dimension_semantics=("parallel", "parallel", "arbitrary"),
        ),
    )(yp3, yt3)
    return num[:, 0, :], sq[:, 0, :]


def dice_loss(ypred, ytrue, reduction="mean", *, target_block_bytes=None):
    """JAX/Pallas equivalent of DiceLoss.forward."""
    # --- glue: squeeze / unsqueeze exactly like the torch module ---
    ypred = jnp.squeeze(ypred)
    ytrue = jnp.squeeze(ytrue)
    if ypred.ndim == 2:
        ypred = ypred[None]
    if ytrue.ndim == 2:
        ytrue = ytrue[None]
    assert ypred.ndim == 3
    assert ytrue.ndim == 3

    ypred = _wire_dtype(ypred)
    ytrue = _wire_dtype(ytrue)

    B, H, W = ypred.shape
    if target_block_bytes is None:
        target_block_bytes = _target_block_bytes()

    # Tiny W: fold groups of k consecutive H rows onto the lane axis via a FREE
    # (contiguous, row-major) reshape -- no transpose / pad relayout passes.
    k = 1
    if W < _FOLD_W_MAX:
        max_k = max(1, _FOLD_LANE_TARGET // W)
        for cand in range(1, max_k + 1):
            if H % cand == 0:
                k = cand
    if k > 1:
        yp3 = ypred.reshape(B, H // k, k * W)
        yt3 = ytrue.reshape(B, H // k, k * W)
    else:
        yp3, yt3 = ypred, ytrue

    num, sq = _dice_sums(yp3, yt3, target_block_bytes)        # each (B, k*W) f32
    if k > 1:
        num = num.reshape(B, k, W).sum(axis=1)                # combine the k residues
        sq = sq.reshape(B, k, W).sum(axis=1)

    den = sq - 2.0 * num                    # = sum_H(yt^2) + sum_H(yp^2)
    dice = 2.0 * num / (den + EPS)
    loss = 1.0 - dice                       # (B, W)

    if isinstance(reduction, str):
        if reduction == "sum":
            return jnp.sum(loss)
        if reduction == "mean":
            return jnp.mean(loss)
        if reduction == "none":
            return loss
        raise ValueError(f"unknown reduction: {reduction!r}")
    # TODO(synk): callable reductions run as plain JAX on the (B, W) loss, not in-kernel.
    return reduction(loss)


def _reference(ypred, ytrue, reduction="mean"):
    ypred = jnp.squeeze(ypred).astype(jnp.float32)
    ytrue = jnp.squeeze(ytrue).astype(jnp.float32)
    if ypred.ndim == 2:
        ypred = ypred[None]
    if ytrue.ndim == 2:
        ytrue = ytrue[None]
    dice = 2 * (ytrue * ypred).sum(1) / ((ytrue ** 2).sum(1) + (ypred ** 2).sum(1) + EPS)
    loss = 1 - dice
    if reduction == "mean":
        return loss.mean()
    if reduction == "sum":
        return loss.sum()
    return loss


if __name__ == "__main__":
    key = jax.random.PRNGKey(0)
    k1, k2, k3, k4, k5, k6, k7, k8 = jax.random.split(key, 8)

    # Case 1: NCHW-like output, C=1, W=16 < 64 -> free reshape fold onto lanes.
    yp1 = jax.random.uniform(k1, (2, 1, 16, 16), dtype=jnp.float32)
    yt1 = (jax.random.uniform(k2, (2, 1, 16, 16), dtype=jnp.float32) > 0.5).astype(jnp.float32)
    out1 = jax.block_until_ready(dice_loss(yp1, yt1))
    ref1 = _reference(yp1, yt1)
    assert jnp.allclose(out1, ref1, atol=1e-4, rtol=1e-4), (out1, ref1)

    # Case 2: lane-aligned W=128 with ragged H=20 (full-dim H block, batch packing).
    yp2 = jax.random.uniform(k3, (3, 1, 20, 128), dtype=jnp.float32)
    yt2 = (jax.random.uniform(k4, (3, 1, 20, 128), dtype=jnp.float32) > 0.5).astype(jnp.float32)
    out2 = jax.block_until_ready(dice_loss(yp2, yt2, reduction="none"))
    ref2 = _reference(yp2, yt2, reduction="none")
    assert out2.shape == ref2.shape
    assert jnp.allclose(out2, ref2, atol=1e-4, rtol=1e-4)

    # Case 3: narrow wire dtypes -- bf16 predictions + int8 mask, streamed natively.
    yp3 = jax.random.uniform(k5, (2, 1, 32, 128), dtype=jnp.float32).astype(jnp.bfloat16)
    yt3 = (jax.random.uniform(k6, (2, 1, 32, 128), dtype=jnp.float32) > 0.5).astype(jnp.int8)
    out3 = jax.block_until_ready(dice_loss(yp3, yt3))
    ref3 = _reference(yp3, yt3)
    assert jnp.allclose(out3, ref3, atol=1e-3, rtol=1e-3), (out3, ref3)

    # Case 4: no-pad path stress -- B=1, ragged W=300 (lane split + clipped tail),
    # ragged H=200 with a tiny forced block budget (multi-step masked H reduction).
    yp4 = jax.random.uniform(k7, (1, 1, 200, 300), dtype=jnp.float32)
    yt4 = (jax.random.uniform(k8, (1, 1, 200, 300), dtype=jnp.float32) > 0.5).astype(jnp.float32)
    out4 = jax.block_until_ready(dice_loss(yp4, yt4, target_block_bytes=32 * 1024))
    ref4 = _reference(yp4, yt4)
    assert jnp.allclose(out4, ref4, atol=1e-4, rtol=1e-4), (out4, ref4)

    print("KERNEL_OK")
</pallas_src>

<mosaic_0001>
module attributes {stable_mosaic.version = 11 : i64} {
  func.func @_dice_sums_kernel(%arg0: i32, %arg1: i32, %arg2: i32, %arg3: memref<2x1x128xf32, #tpu.memory_space<vmem>>, %arg4: memref<2x1x128xf32, #tpu.memory_space<vmem>>, %arg5: memref<2x1x128xf32, #tpu.memory_space<vmem>>, %arg6: memref<2x1x128xf32, #tpu.memory_space<vmem>>) attributes {dimension_semantics = [#tpu.dimension_semantics<parallel>, #tpu.dimension_semantics<parallel>, #tpu.dimension_semantics<arbitrary>], iteration_bounds = array<i64: 1, 2, 1>, scalar_prefetch = 0 : i64, scratch_operands = 0 : i64, tpu.core_type = #tpu.core_type<tc>, window_params = [{transform_indices = @transform_0, window_bounds = array<i64: 2, 1, 128>}, {transform_indices = @transform_1, window_bounds = array<i64: 2, 1, 128>}, {transform_indices = @transform_2, window_bounds = array<i64: 2, 1, 128>}, {transform_indices = @transform_3, window_bounds = array<i64: 2, 1, 128>}]} {
    %c0_i32 = arith.constant 0 : i32
    %0 = arith.cmpi eq, %arg2, %c0_i32 : i32
    %1 = arith.extui %0 : i1 to i32
    %c0_i32_0 = arith.constant 0 : i32
    %2 = arith.cmpi ne, %1, %c0_i32_0 : i32
    scf.if %2 {
      %cst_19 = arith.constant 0.000000e+00 : f32
      %18 = vector.broadcast %cst_19 : f32 to vector<2x1x128xf32>
      %c0_20 = arith.constant 0 : index
      %c0_21 = arith.constant 0 : index
      %c0_22 = arith.constant 0 : index
      %19 = vector.load %arg5[%c0_20, %c0_21, %c0_22] : memref<2x1x128xf32, #tpu.memory_space<vmem>>, vector<2x1x128xf32>
      tpu.vector_store %arg5[%c0_20, %c0_21, %c0_22], %18 {strides = array<i32>} : memref<2x1x128xf32, #tpu.memory_space<vmem>>, vector<2x1x128xf32>,
      %cst_23 = arith.constant 0.000000e+00 : f32
      %20 = vector.broadcast %cst_23 : f32 to vector<2x1x128xf32>
      %c0_24 = arith.constant 0 : index
      %c0_25 = arith.constant 0 : index
      %c0_26 = arith.constant 0 : index
      %21 = vector.load %arg6[%c0_24, %c0_25, %c0_26] : memref<2x1x128xf32, #tpu.memory_space<vmem>>, vector<2x1x128xf32>
      tpu.vector_store %arg6[%c0_24, %c0_25, %c0_26], %20 {strides = array<i32>} : memref<2x1x128xf32, #tpu.memory_space<vmem>>, vector<2x1x128xf32>,
    } else {
    }
    %c0 = arith.constant 0 : index
    %c0_1 = arith.constant 0 : index
    %c0_2 = arith.constant 0 : index
    %3 = vector.load %arg3[%c0, %c0_1, %c0_2] : memref<2x1x128xf32, #tpu.memory_space<vmem>>, vector<2x1x128xf32>
    %c0_3 = arith.constant 0 : index
    %c0_4 = arith.constant 0 : index
    %c0_5 = arith.constant 0 : index
    %4 = vector.load %arg4[%c0_3, %c0_4, %c0_5] : memref<2x1x128xf32, #tpu.memory_space<vmem>>, vector<2x1x128xf32>
    %5 = arith.addf %4, %3 : vector<2x1x128xf32>
    %c0_6 = arith.constant 0 : index
    %c0_7 = arith.constant 0 : index
    %c0_8 = arith.constant 0 : index
    %6 = vector.load %arg5[%c0_6, %c0_7, %c0_8] : memref<2x1x128xf32, #tpu.memory_space<vmem>>, vector<2x1x128xf32>
    %7 = arith.mulf %4, %3 : vector<2x1x128xf32>
    %cst = arith.constant dense<0.000000e+00> : vector<2x128xf32>
    %8 = vector.multi_reduction <add>, %7, %cst [1] : vector<2x1x128xf32> to vector<2x128xf32>
    %9 = vector.shape_cast %8 : vector<2x128xf32> to vector<2x1x128xf32>
    %10 = arith.addf %6, %9 : vector<2x1x128xf32>
    %c0_9 = arith.constant 0 : index
    %c0_10 = arith.constant 0 : index
    %c0_11 = arith.constant 0 : index
    %11 = vector.load %arg5[%c0_9, %c0_10, %c0_11] : memref<2x1x128xf32, #tpu.memory_space<vmem>>, vector<2x1x128xf32>
    tpu.vector_store %arg5[%c0_9, %c0_10, %c0_11], %10 {strides = array<i32>} : memref<2x1x128xf32, #tpu.memory_space<vmem>>, vector<2x1x128xf32>,
    %c0_12 = arith.constant 0 : index
    %c0_13 = arith.constant 0 : index
    %c0_14 = arith.constant 0 : index
    %12 = vector.load %arg6[%c0_12, %c0_13, %c0_14] : memref<2x1x128xf32, #tpu.memory_space<vmem>>, vector<2x1x128xf32>
    %13 = arith.mulf %5, %5 : vector<2x1x128xf32>
    %cst_15 = arith.constant dense<0.000000e+00> : vector<2x128xf32>
    %14 = vector.multi_reduction <add>, %13, %cst_15 [1] : vector<2x1x128xf32> to vector<2x128xf32>
    %15 = vector.shape_cast %14 : vector<2x128xf32> to vector<2x1x128xf32>
    %16 = arith.addf %12, %15 : vector<2x1x128xf32>
    %c0_16 = arith.constant 0 : index
    %c0_17 = arith.constant 0 : index
    %c0_18 = arith.constant 0 : index
    %17 = vector.load %arg6[%c0_16, %c0_17, %c0_18] : memref<2x1x128xf32, #tpu.memory_space<vmem>>, vector<2x1x128xf32>
    tpu.vector_store %arg6[%c0_16, %c0_17, %c0_18], %16 {strides = array<i32>} : memref<2x1x128xf32, #tpu.memory_space<vmem>>, vector<2x1x128xf32>,
    return
  }
  func.func @transform_0(%arg0: i32, %arg1: i32, %arg2: i32) -> (i32, i32, i32) {
    %c0_i32 = arith.constant 0 : i32
    return %arg0, %arg2, %arg1 : i32, i32, i32
  }
  func.func @transform_1(%arg0: i32, %arg1: i32, %arg2: i32) -> (i32, i32, i32) {
    %c0_i32 = arith.constant 0 : i32
    return %arg0, %arg2, %arg1 : i32, i32, i32
  }
  func.func @transform_2(%arg0: i32, %arg1: i32, %arg2: i32) -> (i32, i32, i32) {
    %c0_i32 = arith.constant 0 : i32
    %c0_i32_0 = arith.constant 0 : i32
    return %arg0, %c0_i32, %arg1 : i32, i32, i32
  }
  func.func @transform_3(%arg0: i32, %arg1: i32, %arg2: i32) -> (i32, i32, i32) {
    %c0_i32 = arith.constant 0 : i32
    %c0_i32_0 = arith.constant 0 : i32
    return %arg0, %c0_i32, %arg1 : i32, i32, i32
  }
}

</mosaic_0001>

<bundles_post_ra>
// kernel: tpu_custom_call.1
= control target key start
LH: loop header
LB: loop body
LE: loop exit
PB: predicated region body
PF: predicated region fallthrough
CT: control target
= control target key end

     0   :  { %9 = vsyncpa [#allocation3], 0  ;;  %s1096_s0 = inlined_call_operand.hbm [shape: f32[2,1,256], index: 0, kind: input, shape index: {}]   ;;  %s1097_s1 = inlined_call_operand.hbm [shape: f32[2,1,256], index: 1, kind: input, shape index: {}]   ;;  %s1098_s2 = inlined_call_operand.hbm [shape: f32[2,1,256], index: 2, kind: output, shape index: {0}]   ;;  %s1099_s3 = inlined_call_operand.hbm [shape: f32[2,1,256], index: 3, kind: output, shape index: {1}]  }
   0x1   :  { %11 = vsyncpa [#allocation3 + $0x1], 0 }
   0x2   :  { %12 = vsyncpa [#allocation6], 0 }
   0x3   :  { %14 = vsyncpa [#allocation6 + $0x1], 0 }
   0x4   :  { %15 = vsyncpa [#allocation4], 0 }
   0x5   :  { %17 = vsyncpa [#allocation4 + $0x1], 0 }
   0x6   :  { %18 = vsyncpa [#allocation9], 0 }
   0x7   :  { %20 = vsyncpa [#allocation9 + $0x1], 0  ;;  %s816_s12 = smov 0   ;;  %s818_s13 = smov 0  }
   0x8   :  { %s820_s14 = smov 0   ;;  %s822_s15 = smov 0  }
   0x9   :  { %s824_s16 = smov 0   ;;  %s826_s17 = smov 0  }
   0xa LB: > { %s507_s18 = sadd.s32 4294967295, %s783_s17   ;;  %s508_s19 = sadd.s32 4294967294, %s783_s17   ;;  %s783_s17 = sphi %s826_s17, %s26_s17   ;;  %s779_s16 = sphi %s824_s16, %s1118_s16   ;;  %s775_s15 = sphi %s822_s15, %s1117_s15   ;;  %s771_s14 = sphi %s820_s14, %s1116_s14   ;;  %s767_s13 = sphi %s818_s13, %s1115_s13   ;;  %s763_s12 = sphi %s816_s12, %s1114_s12  }
   0xb   : > { %s41_s20 = sadd.s32 1, %s779_s16  ;;  %s56_s21 = sadd.s32 1, %s771_s14 }
   0xc   : > { %p43_p0 = scmp.ge.s32.totalorder %s41_s20, 2  ;;  %p63_p1 = scmp.ne.s32.totalorder %s771_s14, %s767_s13 }
   0xd   : > { %p64_p2 = scmp.eq.s32.totalorder %s783_s17, 0  ;;  %p69_p3 = scmp.ne.s32.totalorder %s767_s13, %s763_s12 }
   0xe   : > { %s1120_s20 = smov (%p43_p0, %s41_s20), 0  ;;  %p70_p5 = scmp.eq.s32.totalorder %s507_s18, 0 }
   0xf   : > { %p857_p4 = por %p64_p2, %p63_p1  ;;  %s52_s23 = ssub.s32 %s779_s16, %s1120_s20 }
  0x10   : > { %p125_p6 = scmp.eq.s32.totalorder %s507_s18, 1  ;;  %p54_p7 = scmp.eq.s32.totalorder %s52_s23, 0 }
  0x11   : > { %p863_p8 = por %p70_p5, %p69_p3  ;;  %p131_p10 = scmp.eq.s32.totalorder %s508_s19, 1 }
  0x12   : > { %p867_p9 = por %p125_p6, %p63_p1  ;;  %p548_p13 = scmp.lt.s32.totalorder %s783_s17, 2 }
  0x13   : > { %s1104_s24 = scalar_select %p863_p8, 1, 0 }
  0x14   : > { %s1105_s25 = scalar_select %p867_p9, 1, 0 }
  0x15   : > { %s872_s26 = scalar_select %p54_p7, %s771_s14, %s56_s21  }
  0x16   : > { %p874_p11 = por %p131_p10, %p69_p3  ;;  %s881_s28 = sand.u32 1, %s771_s14  }
  0x17   : > { %s511_s29 = sshll.u32 %s881_s28, 1  ;;  %s512_s30 = sshll.u32 %s779_s16, 4 }
  0x18   : > { %s1106_s27 = scalar_select %p874_p11, 1, 0 }
  0x19   : > { %s890_s6 = scalar_lea.hbm %s1096_s0, %s512_s30  ;;  %s183_s7 = scalar_lea.vmem [#allocation2], %s511_s29 }
  0x1a   : > { %s194_s8 = sshll.u32 %s183_s7, 4  ;;  %p898_p0 = pnand %p548_p13, %p857_p4  ;;  %s894_s8 = int_to_ptr.vmem [resolvable:$true] %s194_s8 }
  0x1b   : > { %s180_s10 = scalar_lea.sflag [#allocation3], %s881_s28  ;;  %s605_s11 = scalar_lea.hbm %s890_s6, 32 }
  0x1c   : > { %p606_p1 = scmp.ne.s32.totalorder %s890_s6, %s605_s11  ;;  %p607_p2 = pneg %p898_p0 }
  0x1d   : > { %s610_s21 = scalar_lea.hbm %s1096_s0, 64  ;;  %p611_p4 = scmp.lt.u32.totalorder %s890_s6, %s1096_s0 }
  0x1e   : > { %p608_p3 = pnand %p607_p2, %p606_p1  ;;  %p612_p6 = scmp.lt.u32.totalorder %s610_s21, %s605_s11 }
  0x1f   : > { %p614_p10 = scmp.lt.u32.totalorder %s605_s11, %s890_s6 }
  0x20   : > { %p609_p5 = pneg %p608_p3  ;;  %p613_p7 = por %p612_p6, %p611_p4 }
  0x22   : > { %p615_p13 = por %p614_p10, %p613_p7 }
  0x24   : > { %p616_p12 = pnand %p615_p13, %p609_p5 }
  0x26   : > { %619 = shalt.err (!%p616_p12)
}
  0x27   : > { %s620_s4 = scalar_lea.vmem %s894_s8, 32  ;;  %s785_s5 = smov [#allocation2]  }
  0x28   : > { %p621_p1 = scmp.ne.s32.totalorder %s894_s8, %s620_s4  ;;  %s625_s7 = sshll.u32 %s785_s5, 4  ;;  %s626_s7 = int_to_ptr.vmem [resolvable:$false] %s625_s7 }
  0x29   : > { %s627_s18 = scalar_lea.vmem %s626_s7, 64  ;;  %p628_p9 = scmp.lt.s32.totalorder %s894_s8, %s626_s7 }
  0x2a   : > { %p623_p3 = pnand %p621_p1, %p607_p2  ;;  %p629_p4 = scmp.lt.s32.totalorder %s627_s18, %s620_s4 }
  0x2c   : > { %p624_p11 = pneg %p623_p3  ;;  %p630_p6 = por %p629_p4, %p628_p9 }
  0x2e   : > { %p631_p7 = pnand %p630_p6, %p624_p11 }
  0x30   : > { %634 = shalt.err (!%p631_p7)
}
  0x31   : > { %s1101_s11 = smov 32   ;;  %s787_s19 = smov 16  }
  0x32   : > { %s788_s21 = smov 1   ;;  %p515_p9 = scmp.ge.s32.totalorder %s783_s17, 1 }
  0x33   : > { %537 = dma.hbm_to_vmem [thread:$0]  (!%p898_p0), %s890_s6, 32, %s894_s8, %s180_s10, %s1101_s11, %s787_s19, %s788_s21  }
  0x34   : > { %p227_p11 = scmp.lt.s32.totalorder %s783_s17, 3  ;;  %s944_s5 = scalar_lea.hbm %s1097_s1, %s512_s30 }
  0x35   : > { %s208_s7 = scalar_lea.vmem [#allocation5], %s511_s29  ;;  %s205_s6 = scalar_lea.sflag [#allocation6], %s881_s28 }
  0x36   : > { %p935_p12 = pnand %p515_p9, %p227_p11  ;;  %s219_s18 = sshll.u32 %s208_s7, 4  ;;  %s948_s18 = int_to_ptr.vmem [resolvable:$true] %s219_s18 }
  0x37   : > { %s635_s8 = scalar_lea.hbm %s944_s5, 32  ;;  %s640_s30 = scalar_lea.hbm %s1097_s1, 64 }
  0x38   : > { %p636_p5 = scmp.ne.s32.totalorder %s944_s5, %s635_s8  ;;  %p641_p1 = scmp.lt.u32.totalorder %s944_s5, %s1097_s1 }
  0x39   : > { %p642_p3 = scmp.lt.u32.totalorder %s640_s30, %s635_s8  ;;  %p644_p6 = scmp.lt.u32.totalorder %s635_s8, %s944_s5 }
  0x3a   : > { %p638_p10 = pnand %p636_p5, %p607_p2 }
  0x3b   : > { %p643_p4 = por %p642_p3, %p641_p1 }
  0x3c   : > { %p639_p13 = pneg %p638_p10 }
  0x3d   : > { %p645_p7 = por %p644_p6, %p643_p4 }
  0x3f   : > { %p646_p9 = pnand %p645_p7, %p639_p13 }
  0x41   : > { %649 = shalt.err (!%p646_p9)
}
  0x42   : > { %s650_s29 = scalar_lea.vmem %s948_s18, 32  ;;  %s789_s7 = smov [#allocation5]  }
  0x43   : > { %p651_p11 = scmp.ne.s32.totalorder %s948_s18, %s650_s29  ;;  %s655_s10 = sshll.u32 %s789_s7, 4  ;;  %s656_s10 = int_to_ptr.vmem [resolvable:$false] %s655_s10 }
  0x44   : > { %s657_s11 = scalar_lea.vmem %s656_s10, 64  ;;  %p658_p8 = scmp.lt.s32.totalorder %s948_s18, %s656_s10 }
  0x45   : > { %p653_p5 = pnand %p651_p11, %p607_p2  ;;  %p659_p1 = scmp.lt.s32.totalorder %s657_s11, %s650_s29 }
  0x47   : > { %p654_p10 = pneg %p653_p5  ;;  %p660_p3 = por %p659_p1, %p658_p8 }
  0x49   : > { %p661_p4 = pnand %p660_p3, %p654_p10 }
  0x4b   : > { %664 = shalt.err (!%p661_p4)
}
  0x4c   : > { %s1109_s8 = smov 32   ;;  %231 = sbr.rel (%p935_p12) target bundleno = 137 (0x89), region = 28 }
  0x4d   : > { %540 = dma.hbm_to_vmem [thread:$0]  (!%p898_p0), %s944_s5, 32, %s948_s18, %s205_s6, %s1109_s8, %s787_s19, %s788_s21  }
  0x4e   : > { %s982_s23 = sand.u32 (!%p935_p12), 1, %s767_s13   ;;  %p1110_p8 = scmp.ne.s32.totalorder (!%p935_p12), %s1104_s24, 0 }
  0x4f   : > { %s516_s30 = sshll.u32 (!%p935_p12), %s982_s23, 1  ;;  %s234_s4 = scalar_lea.sflag (!%p935_p12), [#allocation3], %s982_s23 }
  0x50   : > { %s237_s9 = scalar_lea.vmem (!%p935_p12), [#allocation2], %s516_s30 }
  0x53   : > { %746 = dma.done.wait (%p1110_p8), %s234_s4, 32  }
  0x54   : > { %748 = vsyncadd (%p1110_p8), %s234_s4, 4294967264  ;;  %s243_s28 = scalar_lea.sflag [#allocation6], %s982_s23  ;;  %s246_s19 = scalar_lea.vmem [#allocation5], %s516_s30 }
  0x55   : > { %750 = dma.done.wait (%p1110_p8), %s243_s28, 32  }
  0x56   : > { %752 = vsyncadd (%p1110_p8), %s243_s28, 4294967264  ;;  %s271_s21 = scalar_lea.vmem [#allocation7], %s516_s30  ;;  %v790_v0 = vmov 0.0   ;;  %s995_s22 = scalar_lea.vmem [#allocation8], %s516_s30  ;;  %v291_v1 = vld [vmem:[%s237_s9] sm:$0x1] }
  0x57   : > { %287 = vst [vmem:[%s271_s21] sm:$0x1] %v790_v0  ;;  %288 = vst [vmem:[%s271_s21 + $0x1] sm:$0x1] %v790_v0  ;;  %s522_s5 = sshll.u32 %s775_s15, 4  ;;  %s338_s18 = sshll.u32 %s271_s21, 4  ;;  %s1006_s18 = int_to_ptr.vmem [resolvable:$true] %s338_s18 }
  0x58   : > { %289 = vst [vmem:[%s995_s22] sm:$0x1] %v790_v0  ;;  %290 = vst [vmem:[%s995_s22 + $0x1] sm:$0x1] %v790_v0  ;;  %v293_v2 = vld [vmem:[%s246_s19] sm:$0x1]  ;;  %s1004_s15 = scalar_lea.hbm %s1098_s2, %s522_s5  ;;  %s356_s29 = sshll.u32 %s995_s22, 4  ;;  %s1015_s29 = int_to_ptr.vmem [resolvable:$true] %s356_s29 }
  0x59   : > { %v292_v3 = vld [vmem:[%s237_s9 + $0x1] sm:$0x1]  ;;  %v299_v5 = vmul.f32 %v293_v2, %v291_v1  ;;  %v294_v6 = vld [vmem:[%s246_s19 + $0x1] sm:$0x1]  ;;  %v295_v8 = vadd.f32 %v293_v2, %v291_v1  ;;  %s1013_s11 = scalar_lea.hbm %s1099_s3, %s522_s5  ;;  %s318_s8 = scalar_lea.sflag [#allocation4], %s982_s23 }
  0x5a   : > { %v300_v9 = vmul.f32 %v294_v6, %v292_v3  ;;  %v296_v11 = vadd.f32 %v294_v6, %v292_v3  ;;  %s665_s30 = scalar_lea.vmem %s1006_s18, 32  ;;  %p1111_p2 = scmp.ne.s32.totalorder %s1105_s25, 0 }
  0x5b   : > { %v309_v13 = vmul.f32 %v295_v8, %v295_v8  ;;  %p666_p0 = scmp.ne.s32.totalorder %s1006_s18, %s665_s30  ;;  %s791_s4 = smov [#allocation7]  }
  0x5c   : > { %v310_v16 = vmul.f32 %v296_v11, %v296_v11  ;;  %s669_s9 = sshll.u32 %s791_s4, 4  ;;  %s670_s9 = int_to_ptr.vmem [resolvable:$false] %s669_s9 }
  0x5d   : > { %p667_p12 = pnand %p666_p0, %p1111_p2  ;;  %s671_s28 = scalar_lea.vmem %s670_s9, 64 }
  0x5e   : > { %v297_v4 = vld [vmem:[%s271_s21] sm:$0x1]  ;;  %v298_v7 = vld [vmem:[%s271_s21 + $0x1] sm:$0x1]  ;;  %p672_p6 = scmp.lt.s32.totalorder %s1006_s18, %s670_s9  ;;  %p673_p7 = scmp.lt.s32.totalorder %s671_s28, %s665_s30 }
  0x5f   : > { %v307_v10 = vld [vmem:[%s995_s22] sm:$0x1]  ;;  %v303_v12 = vadd.f32 %v299_v5, %v297_v4  ;;  %v308_v14 = vld [vmem:[%s995_s22 + $0x1] sm:$0x1]  ;;  %v304_v15 = vadd.f32 %v300_v9, %v298_v7  ;;  %p668_p13 = pneg %p667_p12 }
  0x60   : > { %v313_v17 = vadd.f32 %v309_v13, %v307_v10  ;;  %v314_v18 = vadd.f32 %v310_v16, %v308_v14  ;;  %p674_p9 = por %p673_p7, %p672_p6 }
  0x61   : > { %305 = vst [vmem:[%s271_s21] sm:$0x1] %v303_v12  ;;  %306 = vst [vmem:[%s271_s21 + $0x1] sm:$0x1] %v304_v15 }
  0x62   : > { %315 = vst [vmem:[%s995_s22] sm:$0x1] %v313_v17  ;;  %p675_p11 = pnand %p674_p9, %p668_p13 }
  0x64   : > { %678 = shalt.err (!%p675_p11)
}
  0x65   : > { %s679_s19 = scalar_lea.hbm %s1004_s15, 32  ;;  %s683_s24 = scalar_lea.hbm %s1098_s2, 64 }
  0x66   : > { %p680_p5 = scmp.ne.s32.totalorder %s1004_s15, %s679_s19  ;;  %p684_p3 = scmp.lt.u32.totalorder %s1004_s15, %s1098_s2 }
  0x67   : > { %p685_p4 = scmp.lt.u32.totalorder %s683_s24, %s679_s19  ;;  %p687_p0 = scmp.lt.u32.totalorder %s679_s19, %s1004_s15 }
  0x68   : > { %p681_p10 = pnand %p680_p5, %p1111_p2 }
  0x69   : > { %p686_p8 = por %p685_p4, %p684_p3 }
  0x6a   : > { %p682_p1 = pneg %p681_p10 }
  0x6b   : > { %p688_p12 = por %p687_p0, %p686_p8 }
  0x6d   : > { %p689_p13 = pnand %p688_p12, %p682_p1 }
  0x6f   : > { %692 = shalt.err (!%p689_p13)
}
  0x70   : > { %s792_s10 = smov 16   ;;  %s793_s30 = smov 32   ;;  %316 = vst [vmem:[%s995_s22 + $0x1] sm:$0x1] %v314_v18 }
  0x71   : > { %s794_s4 = smov 1   ;;  %s323_s9 = scalar_lea.sflag [#allocation9], %s982_s23 }
  0x72   : > { %530 = dma.vmem_to_hbm [thread:$0]  (%p1111_p2), %s1006_s18, 32, %s1004_s15, %s318_s8, %s792_s10, %s793_s30, %s794_s4  }
  0x73   : > { %s693_s28 = scalar_lea.vmem %s1015_s29, 32  ;;  %s795_s19 = smov [#allocation8]  }
  0x74   : > { %p694_p6 = scmp.ne.s32.totalorder %s1015_s29, %s693_s28  ;;  %s697_s21 = sshll.u32 %s795_s19, 4  ;;  %s698_s21 = int_to_ptr.vmem [resolvable:$false] %s697_s21 }
  0x75   : > { %s699_s5 = scalar_lea.vmem %s698_s21, 64  ;;  %p700_p11 = scmp.lt.s32.totalorder %s1015_s29, %s698_s21 }
  0x76   : > { %p695_p7 = pnand %p694_p6, %p1111_p2  ;;  %p701_p5 = scmp.lt.s32.totalorder %s699_s5, %s693_s28 }
  0x78   : > { %p696_p9 = pneg %p695_p7  ;;  %p702_p10 = por %p701_p5, %p700_p11 }
  0x7a   : > { %p703_p1 = pnand %p702_p10, %p696_p9 }
  0x7c   : > { %706 = shalt.err (!%p703_p1)
}
  0x7d   : > { %s707_s22 = scalar_lea.hbm %s1013_s11, 32  ;;  %s711_s8 = scalar_lea.hbm %s1099_s3, 64 }
  0x7e   : > { %p708_p3 = scmp.ne.s32.totalorder %s1013_s11, %s707_s22  ;;  %p712_p0 = scmp.lt.u32.totalorder %s1013_s11, %s1099_s3 }
  0x7f   : > { %p713_p12 = scmp.lt.u32.totalorder %s711_s8, %s707_s22  ;;  %p715_p6 = scmp.lt.u32.totalorder %s707_s22, %s1013_s11 }
  0x80   : > { %p709_p4 = pnand %p708_p3, %p1111_p2 }
  0x81   : > { %p714_p13 = por %p713_p12, %p712_p0 }
  0x82   : > { %p710_p8 = pneg %p709_p4 }
  0x83   : > { %p716_p7 = por %p715_p6, %p714_p13 }
  0x85   : > { %p717_p9 = pnand %p716_p7, %p710_p8 }
  0x87   : > { %720 = shalt.err (!%p717_p9)
}
  0x88   : > { %531 = dma.vmem_to_hbm [thread:$0]  (%p1111_p2), %s1015_s29, 32, %s1013_s11, %s323_s9, %s792_s10, %s793_s30, %s794_s4  }
  0x89 PF: > { %s371_s7 = sand.u32 1, %s763_s12   ;;  %p1112_p11 = scmp.ne.s32.totalorder %s1106_s27, 0 }
  0x8a   : > { %p1113_p5 = scmp.ge.s32.totalorder %s783_s17, 2  ;;  %s372_s28 = scalar_lea.sflag [#allocation4], %s371_s7 }
  0x8c   : > { %p542_p10 = pnand %p1113_p5, %p1112_p11 }
  0x8e   : > { %754 = dma.done.wait (!%p542_p10), %s372_s28, 32  }
  0x8f   : > { %756 = vsyncadd (!%p542_p10), %s372_s28, 4294967264  ;;  %s381_s25 = scalar_lea.sflag [#allocation9], %s371_s7 }
  0x90   : > { %758 = dma.done.wait (!%p542_p10), %s381_s25, 32  }
  0x91   : > { %760 = vsyncadd (!%p542_p10), %s381_s25, 4294967264  ;;  %s26_s17 = sadd.s32 1, %s783_s17   ;;  %s1114_s12 = smov %s767_s13 }
  0x92   : > { %p23_p1 = scmp.ge.s32.totalorder %s26_s17, 4   ;;  %s1115_s13 = smov %s771_s14 }
  0x93   : > { %s1116_s14 = smov %s872_s26  ;;  %s1117_s15 = smov %s779_s16 }
  0x94   : > { %s1118_s16 = smov %s1120_s20  ;;  %25 = sbr.rel (!%p23_p1) target bundleno = 10 (0xa), region = 107 }
  0x9b   :  { %386 = vsyncpa [#allocation3], 1 }
  0x9c   :  { %388 = vsyncpa [#allocation3 + $0x1], 1 }
  0x9d   :  { %389 = vsyncpa [#allocation6], 1 }
  0x9e   :  { %391 = vsyncpa [#allocation6 + $0x1], 1 }
  0x9f   :  { %392 = vsyncpa [#allocation4], 1 }
  0xa0   :  { %394 = vsyncpa [#allocation4 + $0x1], 1 }
  0xa1   :  { %395 = vsyncpa [#allocation9], 1 }
  0xa2   :  { %397 = vsyncpa [#allocation9 + $0x1], 1 }

</bundles_post_ra>
